<compile_context>
chip_gen: v6e
topology: v6e:2x2x1
jax: 0.10.0
libtpu: 0.0.40
codegen_flags: <defaults>
</compile_context>

<pallas_src>
import functools

import jax
import jax.numpy as jnp
from jax import lax
from jax.experimental import pallas as pl
from jax.experimental.pallas import tpu as pltpu

EPS = 1e-5
_NEG_INF = -1e30


def _round_up(x, m):
    return (x + m - 1) // m * m


def _tpu_defaults():
    """Returns (vmem_limit_bytes, max_tile_b) tuned per TPU generation."""
    vmem_cap = None
    try:
        vmem_cap = pltpu.get_tpu_info().vmem_capacity_bytes
    except Exception:
        pass
    if vmem_cap is None:
        try:
            kind = jax.devices()[0].device_kind.lower()
            vmem_cap = 64 * 1024 * 1024 if "v7" in kind else 128 * 1024 * 1024
        except Exception:
            vmem_cap = 128 * 1024 * 1024
    if vmem_cap <= 64 * 1024 * 1024:
        # v7x-class: 64 MiB physical VMEM per TensorCore -> leave headroom.
        return 32 * 1024 * 1024, 2048
    # v5e / v6e: 128 MiB physical; the 32 MiB scoped default is the binding
    # constraint, so raise it and allow a larger batch tile.
    return 64 * 1024 * 1024, 4096


# ----------------------------------------------------------------------------
# Fast path: whole (padded) batch resident in VMEM, single kernel invocation.
# ----------------------------------------------------------------------------
def _modelc_fast_kernel(x_ref,
                        w0_ref, g0_ref, be0_ref,
                        w1_ref, g1_ref, be1_ref,
                        w2_ref, g2_ref, be2_ref,
                        out_ref, *, n_valid, n_classes):
    rows, feat = out_ref.shape
    inv_n = 1.0 / float(n_valid)
    ragged = rows > n_valid          # static: padded batch rows exist
    w_dt = w0_ref.dtype

    keep = None
    if ragged:
        keep = lax.broadcasted_iota(jnp.int32, (rows, feat), 0) < n_valid

    def bn(h, g_ref, be_ref, relu):
        # Two-pass (centered) statistics: everything is VMEM-resident so the
        # extra pass is cheap and avoids E[h^2]-E[h]^2 cancellation.
        mean = jnp.sum(h, axis=0, keepdims=True) * inv_n
        d = h - mean
        if ragged:
            d = jnp.where(keep, d, 0.0)
        var = jnp.sum(d * d, axis=0, keepdims=True) * inv_n
        scale = g_ref[...] * lax.rsqrt(var + EPS)      # folded BN affine
        shift = be_ref[...] - mean * scale
        y = h * scale + shift
        if relu:
            y = jnp.maximum(y, 0.0)
            if ragged:
                y = jnp.where(keep, y, 0.0)            # keep pad rows at 0
        return y

    # Linear biases intentionally omitted: cancelled by the BN mean subtraction.
    h0 = jnp.dot(x_ref[...], w0_ref[...], preferred_element_type=jnp.float32)
    a0 = bn(h0, g0_ref, be0_ref, relu=True)
    h1 = jnp.dot(a0.astype(w_dt), w1_ref[...], preferred_element_type=jnp.float32)
    a1 = bn(h1, g1_ref, be1_ref, relu=True)
    h2 = jnp.dot(a1.astype(w_dt), w2_ref[...], preferred_element_type=jnp.float32)
    z = bn(h2, g2_ref, be2_ref, relu=False)

    col_ids = lax.broadcasted_iota(jnp.int32, (rows, feat), 1)
    z = jnp.where(col_ids < n_classes, z, _NEG_INF)    # exclude pad lanes
    m = jnp.max(z, axis=-1, keepdims=True)
    zz = z - m
    lse = jnp.log(jnp.sum(jnp.exp(zz), axis=-1, keepdims=True))
    out_ref[...] = (zz - lse).astype(out_ref.dtype)


# ----------------------------------------------------------------------------
# Streaming path: grid = (4 phases, batch tiles); BN stats in persistent VMEM.
# ----------------------------------------------------------------------------
def _modelc_stream_kernel(x_ref,
                          w0_ref, g0_ref, be0_ref,
                          w1_ref, g1_ref, be1_ref,
                          w2_ref, g2_ref, be2_ref,
                          out_ref, stats_ref,
                          *, n_valid, tile_b, n_tiles, n_classes):
    """phase 0: accumulate sum/sumsq of h0 = x @ W0
       phase 1: recompute h0, bn0+relu, accumulate stats of h1
       phase 2: ... accumulate stats of h2
       phase 3: ... apply bn2 + log_softmax, store lane-dense output."""
    p = pl.program_id(0)
    i = pl.program_id(1)
    feat = out_ref.shape[1]
    inv_n = 1.0 / float(n_valid)
    ragged = (tile_b * n_tiles) > n_valid   # static: only last tile is ragged
    w_dt = w0_ref.dtype

    @pl.when(jnp.logical_and(p == 0, i == 0))
    def _zero_stats():
        stats_ref[...] = jnp.zeros_like(stats_ref)

    def make_keep():
        if not ragged:
            return None
        limit = n_valid - i * tile_b        # >= tile_b on all non-last tiles
        return lax.broadcasted_iota(jnp.int32, (tile_b, feat), 0) < limit

    def masked_relu(h, keep):
        r = jnp.maximum(h, 0.0)
        if keep is not None:
            r = jnp.where(keep, r, 0.0)     # zero pad rows so stats stay exact
        return r

    def accum(h, layer):
        # TODO(synk): single-pass E[h^2]-E[h]^2 accumulation can lose precision
        # for very large batches; switch to a shifted/Welford merge if needed.
        stats_ref[pl.ds(2 * layer, 1), :] += jnp.sum(h, axis=0, keepdims=True)
        stats_ref[pl.ds(2 * layer + 1, 1), :] += jnp.sum(h * h, axis=0, keepdims=True)

    def bn(h, layer, g_ref, be_ref):
        s = stats_ref[pl.ds(2 * layer, 1), :]
        sq = stats_ref[pl.ds(2 * layer + 1, 1), :]
        mean = s * inv_n
        var = jnp.maximum(sq * inv_n - mean * mean, 0.0)   # guard cancellation
        scale = g_ref[...] * lax.rsqrt(var + EPS)          # folded BN affine
        shift = be_ref[...] - mean * scale
        return h * scale + shift

    # Linear biases intentionally omitted: cancelled by the BN mean subtraction.
    def h0_pre():
        return jnp.dot(x_ref[...], w0_ref[...], preferred_element_type=jnp.float32)

    def h1_pre(keep):
        a0 = masked_relu(bn(h0_pre(), 0, g0_ref, be0_ref), keep)
        return jnp.dot(a0.astype(w_dt), w1_ref[...], preferred_element_type=jnp.float32)

    def h2_pre(keep):
        a1 = masked_relu(bn(h1_pre(keep), 1, g1_ref, be1_ref), keep)
        return jnp.dot(a1.astype(w_dt), w2_ref[...], preferred_element_type=jnp.float32)

    @pl.when(p == 0)
    def _phase0():
        accum(h0_pre(), 0)          # no row mask needed/used in phase 0

    @pl.when(p == 1)
    def _phase1():
        accum(h1_pre(make_keep()), 1)

    @pl.when(p == 2)
    def _phase2():
        accum(h2_pre(make_keep()), 2)

    @pl.when(p == 3)
    def _phase3():
        z = bn(h2_pre(make_keep()), 2, g2_ref, be2_ref)
        col_ids = lax.broadcasted_iota(jnp.int32, (tile_b, feat), 1)
        z = jnp.where(col_ids < n_classes, z, _NEG_INF)    # exclude pad lanes
        m = jnp.max(z, axis=-1, keepdims=True)
        zz = z - m
        lse = jnp.log(jnp.sum(jnp.exp(zz), axis=-1, keepdims=True))
        out_ref[...] = (zz - lse).astype(out_ref.dtype)


def _stream_vmem_bytes(tile_b, d_pad, h_pad, x_bytes):
    return (2 * tile_b * d_pad * x_bytes          # double-buffered x tile
            + 2 * tile_b * h_pad * 4              # double-buffered out tile
            + (d_pad + 2 * h_pad) * h_pad * x_bytes   # resident weights
            + 6 * tile_b * h_pad * 4)             # live f32 temporaries (phase 3)


# ----------------------------------------------------------------------------
# Wrapper
# ----------------------------------------------------------------------------
def modelc_forward(x, params, *, tile_b=None, compute_dtype=jnp.bfloat16,
                   force_streaming=False):
    """x: (..., image_size) float; params: dict from init_params()."""
    image_size = params["w0"].shape[0]
    x = x.reshape(-1, image_size)               # mirrors x.view(-1, image_size)
    B, D = x.shape
    fc0 = params["w0"].shape[1]
    fc1 = params["w1"].shape[1]
    fc2 = params["w2"].shape[1]

    d_pad = _round_up(D, 128)                   # lane-full input width
    h_pad = _round_up(max(fc0, fc1, fc2), 128)  # common lane-dense feature width

    vmem_limit, max_tile_b = _tpu_defaults()
    f32 = jnp.float32
    cdt = jnp.dtype(compute_dtype)
    x_bytes = cdt.itemsize

    def pad2(a, rows, cols, dtype, fill=0.0):
        a = a.astype(dtype)
        pr, pc = rows - a.shape[0], cols - a.shape[1]
        if pr or pc:
            a = jnp.pad(a, ((0, pr), (0, pc)), constant_values=fill)
        return a

    # Weights/affine params are tiny and stay resident in VMEM.
    w0 = pad2(params["w0"], d_pad, h_pad, cdt)
    w1 = pad2(params["w1"], h_pad, h_pad, cdt)
    w2 = pad2(params["w2"], h_pad, h_pad, cdt)
    g0 = pad2(params["g0"], 1, h_pad, f32, 1.0)
    g1 = pad2(params["g1"], 1, h_pad, f32, 1.0)
    g2 = pad2(params["g2"], 1, h_pad, f32, 1.0)
    be0 = pad2(params["be0"], 1, h_pad, f32, 0.0)
    be1 = pad2(params["be1"], 1, h_pad, f32, 0.0)
    be2 = pad2(params["be2"], 1, h_pad, f32, 0.0)
    # b0/b1/b2 are deliberately not passed: bias-before-training-mode-BN is a
    # no-op (exact cancellation) — also what keeps zero pad rows out of the stats.

    # ---------- fast path: whole batch resident in VMEM ----------
    b_fast = _round_up(max(B, 16), 16)
    fast_bytes = b_fast * (d_pad * x_bytes + 7 * h_pad * 4)   # x + live f32 slabs
    use_fast = (not force_streaming) and fast_bytes <= int(0.6 * vmem_limit)

    if use_fast:
        x_p = pad2(x, b_fast, d_pad, cdt)
        kernel = functools.partial(_modelc_fast_kernel, n_valid=B, n_classes=fc2)

        def full(shape):
            return pl.BlockSpec(shape, lambda i: (0, 0))

        out_pad = pl.pallas_call(
            kernel,
            out_shape=jax.ShapeDtypeStruct((b_fast, h_pad), f32),
            grid_spec=pltpu.PrefetchScalarGridSpec(
                num_scalar_prefetch=0,
                grid=(1,),
                in_specs=[
                    full((b_fast, d_pad)),
                    full((d_pad, h_pad)), full((1, h_pad)), full((1, h_pad)),
                    full((h_pad, h_pad)), full((1, h_pad)), full((1, h_pad)),
                    full((h_pad, h_pad)), full((1, h_pad)), full((1, h_pad)),
                ],
                out_specs=full((b_fast, h_pad)),
            ),
            compiler_params=pltpu.CompilerParams(
                dimension_semantics=("arbitrary",),
                vmem_limit_bytes=vmem_limit,
            ),
        )(x_p, w0, g0, be0, w1, g1, be1, w2, g2, be2)
        return out_pad[:B, :fc2]

    # ---------- streaming path: 4 phases x batch tiles ----------
    if tile_b is None:
        tile_b = min(max_tile_b, _round_up(B, 16))
        while tile_b > 256 and _stream_vmem_bytes(
                tile_b, d_pad, h_pad, x_bytes) > int(0.75 * vmem_limit):
            tile_b //= 2
    tile_b = max(16, _round_up(tile_b, 16))     # bf16-friendly (16,128) tiles
    b_pad = _round_up(B, tile_b)
    n_tiles = b_pad // tile_b

    x_p = pad2(x, b_pad, d_pad, cdt)
    kernel = functools.partial(_modelc_stream_kernel, n_valid=B, tile_b=tile_b,
                               n_tiles=n_tiles, n_classes=fc2)

    def const(shape):
        return pl.BlockSpec(shape, lambda p, i: (0, 0))   # resident across grid

    # NOTE(v5e): if a profile shows exposed DMA on the x stream, add
    # pipeline_mode=pl.Buffered(3) to the x BlockSpec below.
    grid_spec = pltpu.PrefetchScalarGridSpec(
        num_scalar_prefetch=0,
        grid=(4, n_tiles),
        in_specs=[
            pl.BlockSpec((tile_b, d_pad), lambda p, i: (i, 0)),    # x: streamed
            const((d_pad, h_pad)), const((1, h_pad)), const((1, h_pad)),
            const((h_pad, h_pad)), const((1, h_pad)), const((1, h_pad)),
            const((h_pad, h_pad)), const((1, h_pad)), const((1, h_pad)),
        ],
        # Phases 0-2 park the output on block 0 (resident, never written);
        # phase 3 walks the batch tiles storing lane-dense (tile_b, 128) blocks.
        out_specs=pl.BlockSpec((tile_b, h_pad), lambda p, i: (i * (p // 3), 0)),
        scratch_shapes=[pltpu.VMEM((6, h_pad), jnp.float32)],   # sum/sumsq x 3
    )

    out_pad = pl.pallas_call(
        kernel,
        out_shape=jax.ShapeDtypeStruct((b_pad, h_pad), f32),
        grid_spec=grid_spec,
        compiler_params=pltpu.CompilerParams(
            # phases and cross-tile BN stats are order-dependent
            dimension_semantics=("arbitrary", "arbitrary"),
            vmem_limit_bytes=vmem_limit,
        ),
    )(x_p, w0, g0, be0, w1, g1, be1, w2, g2, be2)
    return out_pad[:B, :fc2]


# ----------------------------------------------------------------------------
# Params / reference
# ----------------------------------------------------------------------------
def init_params(key, image_size, fc0_size=100, fc1_size=50, fc2_size=10):
    """PyTorch-style init: Linear U[-1/sqrt(fan_in), +], BN gamma=1, beta=0.
    Weights stored as (in, out). Biases kept (used by the reference only)."""
    def linear(key, fan_in, fan_out):
        kw, kb = jax.random.split(key)
        bound = 1.0 / jnp.sqrt(fan_in)
        w = jax.random.uniform(kw, (fan_in, fan_out), jnp.float32, -bound, bound)
        b = jax.random.uniform(kb, (1, fan_out), jnp.float32, -bound, bound)
        return w, b

    k0, k1, k2 = jax.random.split(key, 3)
    w0, b0 = linear(k0, image_size, fc0_size)
    w1, b1 = linear(k1, fc0_size, fc1_size)
    w2, b2 = linear(k2, fc1_size, fc2_size)
    ones, zeros = jnp.ones, jnp.zeros
    return dict(
        w0=w0, b0=b0, g0=ones((1, fc0_size), jnp.float32), be0=zeros((1, fc0_size), jnp.float32),
        w1=w1, b1=b1, g1=ones((1, fc1_size), jnp.float32), be1=zeros((1, fc1_size), jnp.float32),
        w2=w2, b2=b2, g2=ones((1, fc2_size), jnp.float32), be2=zeros((1, fc2_size), jnp.float32),
    )


def modelc_reference(x, p, compute_dtype=jnp.float32):
    """Pure-JAX reference. compute_dtype controls the matmul input dtype only
    (all BN / softmax math stays f32), mirroring the kernel's bf16 streams."""
    cdt = jnp.dtype(compute_dtype)
    x = x.reshape(-1, p["w0"].shape[0])

    def dot_(a, w):
        return jnp.dot(a.astype(cdt), w.astype(cdt),
                       preferred_element_type=jnp.float32)

    def bn(h, g, be):
        mu = jnp.mean(h, axis=0, keepdims=True)
        var = jnp.mean((h - mu) ** 2, axis=0, keepdims=True)
        return (h - mu) * lax.rsqrt(var + EPS) * g + be

    h = jnp.maximum(bn(dot_(x, p["w0"]) + p["b0"], p["g0"], p["be0"]), 0.0)
    h = jnp.maximum(bn(dot_(h, p["w1"]) + p["b1"], p["g1"], p["be1"]), 0.0)
    h = bn(dot_(h, p["w2"]) + p["b2"], p["g2"], p["be2"])
    return jax.nn.log_softmax(h, axis=-1)


if __name__ == "__main__":
    image_size = 64   # e.g. 8x8 images already flattened by x.view(-1, image_size)
    batch = 20        # not a multiple of the tile -> exercises row masking

    key = jax.random.PRNGKey(0)
    kx, kp = jax.random.split(key)
    x = jax.random.normal(kx, (batch, image_size), jnp.float32)
    params = init_params(kp, image_size)

    ref_f32 = modelc_reference(x, params, compute_dtype=jnp.float32)
    ref_bf16 = modelc_reference(x, params, compute_dtype=jnp.bfloat16)

    fwd = jax.jit(modelc_forward,
                  static_argnames=("tile_b", "compute_dtype", "force_streaming"))

    # Default path: VMEM-resident fast kernel, bf16 matmul streams.
    out_fast = jax.block_until_ready(fwd(x, params))
    # Forced streaming path: 2 batch tiles of 16 rows, ragged last tile masked.
    out_stream = jax.block_until_ready(fwd(x, params, tile_b=16, force_streaming=True))

    assert out_fast.shape == (batch, 10)
    assert out_stream.shape == (batch, 10)
    # Tight check vs a dtype-matched reference (same bf16 matmul inputs).
    assert float(jnp.max(jnp.abs(out_fast - ref_bf16))) < 2e-3
    assert float(jnp.max(jnp.abs(out_stream - ref_bf16))) < 2e-3
    # Loose sanity check vs the pure-f32 reference (bf16 quantization noise).
    assert float(jnp.max(jnp.abs(out_fast - ref_f32))) < 1e-1

    print("KERNEL_OK")
</pallas_src>

<mosaic_0001>
module attributes {stable_mosaic.version = 11 : i64} {
  func.func @_modelc_fast_kernel(%arg0: i32, %arg1: memref<32x128xbf16, #tpu.memory_space<vmem>>, %arg2: memref<128x128xbf16, #tpu.memory_space<vmem>>, %arg3: memref<1x128xf32, #tpu.memory_space<vmem>>, %arg4: memref<1x128xf32, #tpu.memory_space<vmem>>, %arg5: memref<128x128xbf16, #tpu.memory_space<vmem>>, %arg6: memref<1x128xf32, #tpu.memory_space<vmem>>, %arg7: memref<1x128xf32, #tpu.memory_space<vmem>>, %arg8: memref<128x128xbf16, #tpu.memory_space<vmem>>, %arg9: memref<1x128xf32, #tpu.memory_space<vmem>>, %arg10: memref<1x128xf32, #tpu.memory_space<vmem>>, %arg11: memref<32x128xf32, #tpu.memory_space<vmem>>) attributes {dimension_semantics = [#tpu.dimension_semantics<arbitrary>], iteration_bounds = array<i64: 1>, scalar_prefetch = 0 : i64, scratch_operands = 0 : i64, tpu.core_type = #tpu.core_type<tc>, window_params = [{pipeline_mode = #tpu.pipeline_mode<synchronous>, transform_indices = @transform_0, window_bounds = array<i64: 32, 128>}, {pipeline_mode = #tpu.pipeline_mode<synchronous>, transform_indices = @transform_1, window_bounds = array<i64: 128, 128>}, {pipeline_mode = #tpu.pipeline_mode<synchronous>, transform_indices = @transform_2, window_bounds = array<i64: 1, 128>}, {pipeline_mode = #tpu.pipeline_mode<synchronous>, transform_indices = @transform_3, window_bounds = array<i64: 1, 128>}, {pipeline_mode = #tpu.pipeline_mode<synchronous>, transform_indices = @transform_4, window_bounds = array<i64: 128, 128>}, {pipeline_mode = #tpu.pipeline_mode<synchronous>, transform_indices = @transform_5, window_bounds = array<i64: 1, 128>}, {pipeline_mode = #tpu.pipeline_mode<synchronous>, transform_indices = @transform_6, window_bounds = array<i64: 1, 128>}, {pipeline_mode = #tpu.pipeline_mode<synchronous>, transform_indices = @transform_7, window_bounds = array<i64: 128, 128>}, {pipeline_mode = #tpu.pipeline_mode<synchronous>, transform_indices = @transform_8, window_bounds = array<i64: 1, 128>}, {pipeline_mode = #tpu.pipeline_mode<synchronous>, transform_indices = @transform_9, window_bounds = array<i64: 1, 128>}, {pipeline_mode = #tpu.pipeline_mode<synchronous>, transform_indices = @transform_10, window_bounds = array<i64: 32, 128>}]} {
    %0 = tpu.iota {dimensions = array<i32: 0>} : vector<32x128xi32>
    %c20_i32 = arith.constant 20 : i32
    %1 = vector.broadcast %c20_i32 : i32 to vector<32x128xi32>
    %2 = arith.cmpi slt, %0, %1 : vector<32x128xi32>
    %c0 = arith.constant 0 : index
    %c0_0 = arith.constant 0 : index
    %3 = vector.load %arg1[%c0, %c0_0] : memref<32x128xbf16, #tpu.memory_space<vmem>>, vector<32x128xbf16>
    %c0_1 = arith.constant 0 : index
    %c0_2 = arith.constant 0 : index
    %4 = vector.load %arg2[%c0_1, %c0_2] : memref<128x128xbf16, #tpu.memory_space<vmem>>, vector<128x128xbf16>
    %cst = arith.constant dense<0.000000e+00> : vector<32x128xf32>
    %5 = tpu.matmul %3, %4, %cst {dimension_numbers = #tpu.dot_dimension_numbers<[1], [0], [0], [1], [0, 0, 1, 1], [], []>} : vector<32x128xbf16>, vector<128x128xbf16>, vector<32x128xf32> -> vector<32x128xf32>
    %cst_3 = arith.constant dense<0.000000e+00> : vector<128xf32>
    %6 = vector.multi_reduction <add>, %5, %cst_3 [0] : vector<32x128xf32> to vector<128xf32>
    %7 = vector.shape_cast %6 : vector<128xf32> to vector<1x128xf32>
    %cst_4 = arith.constant 5.000000e-02 : f32
    %8 = vector.broadcast %cst_4 : f32 to vector<1x128xf32>
    %9 = arith.mulf %7, %8 : vector<1x128xf32>
    %10 = vector.broadcast %9 : vector<1x128xf32> to vector<32x128xf32>
    %11 = arith.subf %5, %10 : vector<32x128xf32>
    %cst_5 = arith.constant 0.000000e+00 : f32
    %12 = vector.broadcast %cst_5 : f32 to vector<32x128xf32>
    %13 = arith.select %2, %11, %12 : vector<32x128xi1>, vector<32x128xf32>
    %14 = arith.mulf %13, %13 : vector<32x128xf32>
    %cst_6 = arith.constant dense<0.000000e+00> : vector<128xf32>
    %15 = vector.multi_reduction <add>, %14, %cst_6 [0] : vector<32x128xf32> to vector<128xf32>
    %16 = vector.shape_cast %15 : vector<128xf32> to vector<1x128xf32>
    %cst_7 = arith.constant 5.000000e-02 : f32
    %17 = vector.broadcast %cst_7 : f32 to vector<1x128xf32>
    %18 = arith.mulf %16, %17 : vector<1x128xf32>
    %c0_8 = arith.constant 0 : index
    %c0_9 = arith.constant 0 : index
    %19 = vector.load %arg3[%c0_8, %c0_9] : memref<1x128xf32, #tpu.memory_space<vmem>>, vector<1x128xf32>
    %cst_10 = arith.constant 9.99999974E-6 : f32
    %20 = vector.broadcast %cst_10 : f32 to vector<1x128xf32>
    %21 = arith.addf %18, %20 : vector<1x128xf32>
    %22 = math.rsqrt %21 : vector<1x128xf32>
    %23 = arith.mulf %19, %22 : vector<1x128xf32>
    %c0_11 = arith.constant 0 : index
    %c0_12 = arith.constant 0 : index
    %24 = vector.load %arg4[%c0_11, %c0_12] : memref<1x128xf32, #tpu.memory_space<vmem>>, vector<1x128xf32>
    %25 = arith.mulf %9, %23 : vector<1x128xf32>
    %26 = arith.subf %24, %25 : vector<1x128xf32>
    %27 = vector.broadcast %23 : vector<1x128xf32> to vector<32x128xf32>
    %28 = arith.mulf %5, %27 : vector<32x128xf32>
    %29 = vector.broadcast %26 : vector<1x128xf32> to vector<32x128xf32>
    %30 = arith.addf %28, %29 : vector<32x128xf32>
    %cst_13 = arith.constant 0.000000e+00 : f32
    %31 = vector.broadcast %cst_13 : f32 to vector<32x128xf32>
    %32 = arith.maximumf %30, %31 : vector<32x128xf32>
    %cst_14 = arith.constant 0.000000e+00 : f32
    %33 = vector.broadcast %cst_14 : f32 to vector<32x128xf32>
    %34 = arith.select %2, %32, %33 : vector<32x128xi1>, vector<32x128xf32>
    %35 = arith.truncf %34 : vector<32x128xf32> to vector<32x128xbf16>
    %c0_15 = arith.constant 0 : index
    %c0_16 = arith.constant 0 : index
    %36 = vector.load %arg5[%c0_15, %c0_16] : memref<128x128xbf16, #tpu.memory_space<vmem>>, vector<128x128xbf16>
    %cst_17 = arith.constant dense<0.000000e+00> : vector<32x128xf32>
    %37 = tpu.matmul %35, %36, %cst_17 {dimension_numbers = #tpu.dot_dimension_numbers<[1], [0], [0], [1], [0, 0, 1, 1], [], []>} : vector<32x128xbf16>, vector<128x128xbf16>, vector<32x128xf32> -> vector<32x128xf32>
    %cst_18 = arith.constant dense<0.000000e+00> : vector<128xf32>
    %38 = vector.multi_reduction <add>, %37, %cst_18 [0] : vector<32x128xf32> to vector<128xf32>
    %39 = vector.shape_cast %38 : vector<128xf32> to vector<1x128xf32>
    %cst_19 = arith.constant 5.000000e-02 : f32
    %40 = vector.broadcast %cst_19 : f32 to vector<1x128xf32>
    %41 = arith.mulf %39, %40 : vector<1x128xf32>
    %42 = vector.broadcast %41 : vector<1x128xf32> to vector<32x128xf32>
    %43 = arith.subf %37, %42 : vector<32x128xf32>
    %cst_20 = arith.constant 0.000000e+00 : f32
    %44 = vector.broadcast %cst_20 : f32 to vector<32x128xf32>
    %45 = arith.select %2, %43, %44 : vector<32x128xi1>, vector<32x128xf32>
    %46 = arith.mulf %45, %45 : vector<32x128xf32>
    %cst_21 = arith.constant dense<0.000000e+00> : vector<128xf32>
    %47 = vector.multi_reduction <add>, %46, %cst_21 [0] : vector<32x128xf32> to vector<128xf32>
    %48 = vector.shape_cast %47 : vector<128xf32> to vector<1x128xf32>
    %cst_22 = arith.constant 5.000000e-02 : f32
    %49 = vector.broadcast %cst_22 : f32 to vector<1x128xf32>
    %50 = arith.mulf %48, %49 : vector<1x128xf32>
    %c0_23 = arith.constant 0 : index
    %c0_24 = arith.constant 0 : index
    %51 = vector.load %arg6[%c0_23, %c0_24] : memref<1x128xf32, #tpu.memory_space<vmem>>, vector<1x128xf32>
    %cst_25 = arith.constant 9.99999974E-6 : f32
    %52 = vector.broadcast %cst_25 : f32 to vector<1x128xf32>
    %53 = arith.addf %50, %52 : vector<1x128xf32>
    %54 = math.rsqrt %53 : vector<1x128xf32>
    %55 = arith.mulf %51, %54 : vector<1x128xf32>
    %c0_26 = arith.constant 0 : index
    %c0_27 = arith.constant 0 : index
    %56 = vector.load %arg7[%c0_26, %c0_27] : memref<1x128xf32, #tpu.memory_space<vmem>>, vector<1x128xf32>
    %57 = arith.mulf %41, %55 : vector<1x128xf32>
    %58 = arith.subf %56, %57 : vector<1x128xf32>
    %59 = vector.broadcast %55 : vector<1x128xf32> to vector<32x128xf32>
    %60 = arith.mulf %37, %59 : vector<32x128xf32>
    %61 = vector.broadcast %58 : vector<1x128xf32> to vector<32x128xf32>
    %62 = arith.addf %60, %61 : vector<32x128xf32>
    %cst_28 = arith.constant 0.000000e+00 : f32
    %63 = vector.broadcast %cst_28 : f32 to vector<32x128xf32>
    %64 = arith.maximumf %62, %63 : vector<32x128xf32>
    %cst_29 = arith.constant 0.000000e+00 : f32
    %65 = vector.broadcast %cst_29 : f32 to vector<32x128xf32>
    %66 = arith.select %2, %64, %65 : vector<32x128xi1>, vector<32x128xf32>
    %67 = arith.truncf %66 : vector<32x128xf32> to vector<32x128xbf16>
    %c0_30 = arith.constant 0 : index
    %c0_31 = arith.constant 0 : index
    %68 = vector.load %arg8[%c0_30, %c0_31] : memref<128x128xbf16, #tpu.memory_space<vmem>>, vector<128x128xbf16>
    %cst_32 = arith.constant dense<0.000000e+00> : vector<32x128xf32>
    %69 = tpu.matmul %67, %68, %cst_32 {dimension_numbers = #tpu.dot_dimension_numbers<[1], [0], [0], [1], [0, 0, 1, 1], [], []>} : vector<32x128xbf16>, vector<128x128xbf16>, vector<32x128xf32> -> vector<32x128xf32>
    %cst_33 = arith.constant dense<0.000000e+00> : vector<128xf32>
    %70 = vector.multi_reduction <add>, %69, %cst_33 [0] : vector<32x128xf32> to vector<128xf32>
    %71 = vector.shape_cast %70 : vector<128xf32> to vector<1x128xf32>
    %cst_34 = arith.constant 5.000000e-02 : f32
    %72 = vector.broadcast %cst_34 : f32 to vector<1x128xf32>
    %73 = arith.mulf %71, %72 : vector<1x128xf32>
    %74 = vector.broadcast %73 : vector<1x128xf32> to vector<32x128xf32>
    %75 = arith.subf %69, %74 : vector<32x128xf32>
    %cst_35 = arith.constant 0.000000e+00 : f32
    %76 = vector.broadcast %cst_35 : f32 to vector<32x128xf32>
    %77 = arith.select %2, %75, %76 : vector<32x128xi1>, vector<32x128xf32>
    %78 = arith.mulf %77, %77 : vector<32x128xf32>
    %cst_36 = arith.constant dense<0.000000e+00> : vector<128xf32>
    %79 = vector.multi_reduction <add>, %78, %cst_36 [0] : vector<32x128xf32> to vector<128xf32>
    %80 = vector.shape_cast %79 : vector<128xf32> to vector<1x128xf32>
    %cst_37 = arith.constant 5.000000e-02 : f32
    %81 = vector.broadcast %cst_37 : f32 to vector<1x128xf32>
    %82 = arith.mulf %80, %81 : vector<1x128xf32>
    %c0_38 = arith.constant 0 : index
    %c0_39 = arith.constant 0 : index
    %83 = vector.load %arg9[%c0_38, %c0_39] : memref<1x128xf32, #tpu.memory_space<vmem>>, vector<1x128xf32>
    %cst_40 = arith.constant 9.99999974E-6 : f32
    %84 = vector.broadcast %cst_40 : f32 to vector<1x128xf32>
    %85 = arith.addf %82, %84 : vector<1x128xf32>
    %86 = math.rsqrt %85 : vector<1x128xf32>
    %87 = arith.mulf %83, %86 : vector<1x128xf32>
    %c0_41 = arith.constant 0 : index
    %c0_42 = arith.constant 0 : index
    %88 = vector.load %arg10[%c0_41, %c0_42] : memref<1x128xf32, #tpu.memory_space<vmem>>, vector<1x128xf32>
    %89 = arith.mulf %73, %87 : vector<1x128xf32>
    %90 = arith.subf %88, %89 : vector<1x128xf32>
    %91 = vector.broadcast %87 : vector<1x128xf32> to vector<32x128xf32>
    %92 = arith.mulf %69, %91 : vector<32x128xf32>
    %93 = vector.broadcast %90 : vector<1x128xf32> to vector<32x128xf32>
    %94 = arith.addf %92, %93 : vector<32x128xf32>
    %95 = tpu.iota {dimensions = array<i32: 1>} : vector<32x128xi32>
    %c10_i32 = arith.constant 10 : i32
    %96 = vector.broadcast %c10_i32 : i32 to vector<32x128xi32>
    %97 = arith.cmpi slt, %95, %96 : vector<32x128xi32>
    %cst_43 = arith.constant -1.000000e+30 : f32
    %98 = vector.broadcast %cst_43 : f32 to vector<32x128xf32>
    %99 = arith.select %97, %94, %98 : vector<32x128xi1>, vector<32x128xf32>
    %cst_44 = arith.constant dense<0xFF800000> : vector<32xf32>
    %100 = vector.multi_reduction <maximumf>, %99, %cst_44 [1] : vector<32x128xf32> to vector<32xf32>
    %101 = vector.shape_cast %100 : vector<32xf32> to vector<32x1xf32>
    %102 = vector.broadcast %101 : vector<32x1xf32> to vector<32x128xf32>
    %103 = arith.subf %99, %102 : vector<32x128xf32>
    %104 = math.exp %103 : vector<32x128xf32>
    %cst_45 = arith.constant dense<0.000000e+00> : vector<32xf32>
    %105 = vector.multi_reduction <add>, %104, %cst_45 [1] : vector<32x128xf32> to vector<32xf32>
    %106 = vector.shape_cast %105 : vector<32xf32> to vector<32x1xf32>
    %107 = math.log %106 : vector<32x1xf32>
    %108 = vector.broadcast %107 : vector<32x1xf32> to vector<32x128xf32>
    %109 = arith.subf %103, %108 : vector<32x128xf32>
    %c0_46 = arith.constant 0 : index
    %c0_47 = arith.constant 0 : index
    %110 = vector.load %arg11[%c0_46, %c0_47] : memref<32x128xf32, #tpu.memory_space<vmem>>, vector<32x128xf32>
    tpu.vector_store %arg11[%c0_46, %c0_47], %109 {strides = array<i32>} : memref<32x128xf32, #tpu.memory_space<vmem>>, vector<32x128xf32>,
    return
  }
  func.func @transform_0(%arg0: i32) -> (i32, i32) {
    %c0_i32 = arith.constant 0 : i32
    %c0_i32_0 = arith.constant 0 : i32
    %c0_i32_1 = arith.constant 0 : i32
    return %c0_i32, %c0_i32_0 : i32, i32
  }
  func.func @transform_1(%arg0: i32) -> (i32, i32) {
    %c0_i32 = arith.constant 0 : i32
    %c0_i32_0 = arith.constant 0 : i32
    %c0_i32_1 = arith.constant 0 : i32
    return %c0_i32, %c0_i32_0 : i32, i32
  }
  func.func @transform_2(%arg0: i32) -> (i32, i32) {
    %c0_i32 = arith.constant 0 : i32
    %c0_i32_0 = arith.constant 0 : i32
    %c0_i32_1 = arith.constant 0 : i32
    return %c0_i32, %c0_i32_0 : i32, i32
  }
  func.func @transform_3(%arg0: i32) -> (i32, i32) {
    %c0_i32 = arith.constant 0 : i32
    %c0_i32_0 = arith.constant 0 : i32
    %c0_i32_1 = arith.constant 0 : i32
    return %c0_i32, %c0_i32_0 : i32, i32
  }
  func.func @transform_4(%arg0: i32) -> (i32, i32) {
    %c0_i32 = arith.constant 0 : i32
    %c0_i32_0 = arith.constant 0 : i32
    %c0_i32_1 = arith.constant 0 : i32
    return %c0_i32, %c0_i32_0 : i32, i32
  }
  func.func @transform_5(%arg0: i32) -> (i32, i32) {
    %c0_i32 = arith.constant 0 : i32
    %c0_i32_0 = arith.constant 0 : i32
    %c0_i32_1 = arith.constant 0 : i32
    return %c0_i32, %c0_i32_0 : i32, i32
  }
  func.func @transform_6(%arg0: i32) -> (i32, i32) {
    %c0_i32 = arith.constant 0 : i32
    %c0_i32_0 = arith.constant 0 : i32
    %c0_i32_1 = arith.constant 0 : i32
    return %c0_i32, %c0_i32_0 : i32, i32
  }
  func.func @transform_7(%arg0: i32) -> (i32, i32) {
    %c0_i32 = arith.constant 0 : i32
    %c0_i32_0 = arith.constant 0 : i32
    %c0_i32_1 = arith.constant 0 : i32
    return %c0_i32, %c0_i32_0 : i32, i32
  }
  func.func @transform_8(%arg0: i32) -> (i32, i32) {
    %c0_i32 = arith.constant 0 : i32
    %c0_i32_0 = arith.constant 0 : i32
    %c0_i32_1 = arith.constant 0 : i32
    return %c0_i32, %c0_i32_0 : i32, i32
  }
  func.func @transform_9(%arg0: i32) -> (i32, i32) {
    %c0_i32 = arith.constant 0 : i32
    %c0_i32_0 = arith.constant 0 : i32
    %c0_i32_1 = arith.constant 0 : i32
    return %c0_i32, %c0_i32_0 : i32, i32
  }
  func.func @transform_10(%arg0: i32) -> (i32, i32) {
    %c0_i32 = arith.constant 0 : i32
    %c0_i32_0 = arith.constant 0 : i32
    %c0_i32_1 = arith.constant 0 : i32
    return %c0_i32, %c0_i32_0 : i32, i32
  }
}

</mosaic_0001>

<bundles_post_ra>
// kernel: modelc_forward.1
= control target key start
LH: loop header
LB: loop body
LE: loop exit
PB: predicated region body
PF: predicated region fallthrough
CT: control target
= control target key end

     0   :  { %v36_v26 = vlaneseq  ;;  %vm824_vm1 = vmmov 1   ;;  %s1020_s1 = inlined_call_operand.vmem [shape: bf16[128,128], index: 1, kind: input, shape index: {}]   ;;  %s1021_s0 = inlined_call_operand.vmem [shape: bf16[32,128], index: 0, kind: input, shape index: {}]   ;;  %s1022_s4 = inlined_call_operand.vmem [shape: bf16[128,128], index: 4, kind: input, shape index: {}]   ;;  %s1023_s2 = inlined_call_operand.vmem [shape: f32[1,128], index: 2, kind: input, shape index: {}]   ;;  %s1024_s3 = inlined_call_operand.vmem [shape: f32[1,128], index: 3, kind: input, shape index: {}]   ;;  %s1025_s7 = inlined_call_operand.vmem [shape: bf16[128,128], index: 7, kind: input, shape index: {}]   ;;  %s1026_s5 = inlined_call_operand.vmem [shape: f32[1,128], index: 5, kind: input, shape index: {}]   ;;  %s1027_s6 = inlined_call_operand.vmem [shape: f32[1,128], index: 6, kind: input, shape index: {}]   ;;  %s1028_s8 = inlined_call_operand.vmem [shape: f32[1,128], index: 8, kind: input, shape index: {}]   ;;  %s1029_s9 = inlined_call_operand.vmem [shape: f32[1,128], index: 9, kind: input, shape index: {}]   ;;  %s1030_s10 = inlined_call_operand.vmem [shape: f32[32,128], index: 10, kind: output, shape index: {}]  }
   0x1   :  { %v776_v0 = vld [vmem:[%s1020_s1 + $0x38] sm:$0xff]   ;;  %v777_v1 = vld [vmem:[%s1020_s1 + $0x30] sm:$0xff]   ;;  %v778_v2 = vld [vmem:[%s1020_s1 + $0x28] sm:$0xff]  }
   0x2   :  { %714 = vmatprep.subr.bf16.mxu0 %v776_v0  ;;  %v779_v3 = vld [vmem:[%s1020_s1 + $0x20] sm:$0xff]   ;;  %v780_v5 = vld [vmem:[%s1020_s1 + $0x18] sm:$0xff]   ;;  %v781_v6 = vld [vmem:[%s1020_s1 + $0x10] sm:$0xff]   ;;  %v37_v29 = vshrl.u32 %v36_v26, 7 }
   0x3   :  { %715 = vmatpush3.bf16.msra.mxu0 %v776_v0  ;;  %v784_v4 = vld [vmem:[%s1021_s0] sm:$0xff]   ;;  %v782_v7 = vld [vmem:[%s1020_s1 + $0x8] sm:$0xff]   ;;  %v786_v10 = vld [vmem:[%s1022_s4 + $0x38] sm:$0xff]  }
   0x4   :  { %716 = vmatprep.subr.bf16.mxu0 %v777_v1  ;;  %730 = vmatprep.mubr.bf16.mxu0 %v784_v4  ;;  %v783_v8 = vld [vmem:[%s1020_s1] sm:$0xff]   ;;  %v785_v9 = vld [vmem:[%s1021_s0 + $0x8] sm:$0xff]   ;;  %v787_v11 = vld [vmem:[%s1022_s4 + $0x30] sm:$0xff]   ;;  %v936_v32 = vadd.s32 16, %v37_v29  ;;  %v944_v53 = vsub.s32 0, %v37_v29 }
   0x5   :  { %734 = vmatprep.subr.bf16.mxu1 %v786_v10  ;;  %v788_v12 = vld [vmem:[%s1022_s4 + $0x28] sm:$0xff]   ;;  %v789_v13 = vld [vmem:[%s1022_s4 + $0x20] sm:$0xff]   ;;  %v790_v14 = vld [vmem:[%s1022_s4 + $0x18] sm:$0xff]  }
   0x6   :  { %735 = vmatpush3.bf16.msra.mxu1 %v786_v10  ;;  %v791_v15 = vld [vmem:[%s1022_s4 + $0x10] sm:$0xff]   ;;  %v792_v16 = vld [vmem:[%s1022_s4 + $0x8] sm:$0xff]   ;;  %v793_v17 = vld [vmem:[%s1022_s4] sm:$0xff]   ;;  %vm43_vm0 = vcmp.lt.s32.totalorder %v936_v32, 20 }
   0x7   :  { %717 = vmatpush3.bf16.msra.mxu0 %v777_v1  ;;  %736 = vmatprep.subr.bf16.mxu1 %v787_v11  ;;  %v206_v52 = vld [vmem:[%s1023_s2] sm:$0x1]  ;;  %vm953_vm2 = vmpackc.low %vm824_vm1, %vm43_vm0  ;;  %v794_v10 = vld [vmem:[%s1025_s7 + $0x38] sm:$0xff]  }
   0x8   :  { %718 = vmatprep.subr.bf16.mxu0 %v778_v2  ;;  %v210_v56 = vld [vmem:[%s1024_s3] sm:$0x1] }
   0xa   :  { %737 = vmatpush3.bf16.msra.mxu1 %v787_v11  ;;  %v795_v11 = vld [vmem:[%s1025_s7 + $0x30] sm:$0xff]  }
   0xb   :  { %719 = vmatpush3.bf16.msra.mxu0 %v778_v2  ;;  %738 = vmatprep.subr.bf16.mxu1 %v788_v12 }
   0xc   :  { %720 = vmatprep.subr.bf16.mxu0 %v779_v3 }
   0xe   :  { %739 = vmatpush3.bf16.msra.mxu1 %v788_v12  ;;  %v796_v12 = vld [vmem:[%s1025_s7 + $0x28] sm:$0xff]  }
   0xf   :  { %721 = vmatpush3.bf16.msra.mxu0 %v779_v3  ;;  %740 = vmatprep.subr.bf16.mxu1 %v789_v13 }
  0x10   :  { %722 = vmatprep.subr.bf16.mxu0 %v780_v5 }
  0x12   :  { %741 = vmatpush3.bf16.msra.mxu1 %v789_v13  ;;  %v797_v13 = vld [vmem:[%s1025_s7 + $0x20] sm:$0xff]  }
  0x13   :  { %723 = vmatpush3.bf16.msra.mxu0 %v780_v5  ;;  %742 = vmatprep.subr.bf16.mxu1 %v790_v14 }
  0x14   :  { %724 = vmatprep.subr.bf16.mxu0 %v781_v6 }
  0x16   :  { %743 = vmatpush3.bf16.msra.mxu1 %v790_v14  ;;  %v798_v14 = vld [vmem:[%s1025_s7 + $0x18] sm:$0xff]  }
  0x17   :  { %725 = vmatpush3.bf16.msra.mxu0 %v781_v6  ;;  %744 = vmatprep.subr.bf16.mxu1 %v791_v15 }
  0x18   :  { %726 = vmatprep.subr.bf16.mxu0 %v782_v7 }
  0x1a   :  { %745 = vmatpush3.bf16.msra.mxu1 %v791_v15  ;;  %v799_v15 = vld [vmem:[%s1025_s7 + $0x10] sm:$0xff]  }
  0x1b   :  { %727 = vmatpush3.bf16.msra.mxu0 %v782_v7  ;;  %746 = vmatprep.subr.bf16.mxu1 %v792_v16 }
  0x1c   :  { %728 = vmatprep.subr.bf16.mxu0 %v783_v8 }
  0x1e   :  { %747 = vmatpush3.bf16.msra.mxu1 %v792_v16  ;;  %v800_v16 = vld [vmem:[%s1025_s7 + $0x8] sm:$0xff]  }
  0x1f   :  { %729 = vmatpush3.bf16.msra.mxu0 %v783_v8  ;;  %748 = vmatprep.subr.bf16.mxu1 %v793_v17  ;;  %v825_v8 = vmov 0.0  }
  0x20   :  { %754 = vmatprep.subr.bf16.mxu0 %v794_v10 }
  0x22   :  { %731 = vmatmul.mubr.bf16.vlgmr.msra.gmra.mxu0 %v785_v9  ;;  %749 = vmatpush3.bf16.msra.mxu1 %v793_v17  ;;  %v801_v17 = vld [vmem:[%s1025_s7] sm:$0xff]  }
  0x23   :  { %755 = vmatpush3.bf16.msra.mxu0 %v794_v10 }
  0x24   :  { %756 = vmatprep.subr.bf16.mxu0 %v795_v11 }
  0x27   :  { %757 = vmatpush3.bf16.msra.mxu0 %v795_v11 }
  0x28   :  { %758 = vmatprep.subr.bf16.mxu0 %v796_v12 }
  0x2b   :  { %759 = vmatpush3.bf16.msra.mxu0 %v796_v12 }
  0x2c   :  { %760 = vmatprep.subr.bf16.mxu0 %v797_v13 }
  0x2f   :  { %761 = vmatpush3.bf16.msra.mxu0 %v797_v13 }
  0x30   :  { %762 = vmatprep.subr.bf16.mxu0 %v798_v14 }
  0x33   :  { %763 = vmatpush3.bf16.msra.mxu0 %v798_v14 }
  0x34   :  { %764 = vmatprep.subr.bf16.mxu0 %v799_v15 }
  0x37   :  { %765 = vmatpush3.bf16.msra.mxu0 %v799_v15 }
  0x38   :  { %766 = vmatprep.subr.bf16.mxu0 %v800_v16 }
  0x3b   :  { %767 = vmatpush3.bf16.msra.mxu0 %v800_v16 }
  0x3c   :  { %768 = vmatprep.subr.bf16.mxu0 %v801_v17 }
  0x3f   :  { %769 = vmatpush3.bf16.msra.mxu0 %v801_v17 }
  0xe2   :  { %v732_v18 = vpop.f32.mrf.mxu0 }
  0xe4   :  { %v159_v19 = vpop.f32.mrf.mxu0 }
  0xe6   :  { %v733_v20 = vpop.f32.mrf.mxu0 }
  0xe8   :  { %v162_v21 = vpop.f32.mrf.mxu0 }
  0xe9   :  { %v174_v22 = vadd.f32 %v162_v21, %v159_v19 }
  0xeb   :  { %v175_v23 = vadd.f32 %v732_v18, %v174_v22 }
  0xed   :  { %v176_v24 = vadd.f32 %v733_v20, %v175_v23 }
  0xef   :  { %v177_v25 = vrot.slane %v176_v24, 4 }
  0xf1   :  { %v178_v27 = vadd.f32 %v177_v25, %v176_v24 }
  0xf3   :  { %v179_v28 = vrot.slane %v178_v27, 2 }
  0xf5   :  { %v180_v30 = vadd.f32 %v179_v28, %v178_v27 }
  0xf7   :  { %v181_v31 = vrot.slane %v180_v30, 1 }
  0xf9   :  { %v182_v33 = vadd.f32 %v181_v31, %v180_v30 }
  0xfb   :  { %v183_v34 = vmul.f32 0.05, %v182_v33 }
  0xfd   :  { %v184_v35 = vsub.f32 %v159_v19, %v183_v34  ;;  %v185_v36 = vsub.f32 %v162_v21, %v183_v34  ;;  %v186_v37 = vsub.f32 %v732_v18, %v183_v34 }
  0xff   :  { %v190_v38 = vsel %vm43_vm0, %v186_v37, 0.0  ;;  %v192_v39 = vmul.f32 %v184_v35, %v184_v35  ;;  %v193_v40 = vmul.f32 %v185_v36, %v185_v36 }
 0x100   :  { %v194_v41 = vmul.f32 %v190_v38, %v190_v38 }
 0x101   :  { %v196_v42 = vadd.f32 %v193_v40, %v192_v39 }
 0x103   :  { %v197_v43 = vadd.f32 %v196_v42, %v194_v41 }
 0x105   :  { %v199_v44 = vrot.slane %v197_v43, 4 }
 0x107   :  { %v200_v45 = vadd.f32 %v199_v44, %v197_v43 }
 0x109   :  { %v201_v46 = vrot.slane %v200_v45, 2 }
 0x10b   :  { %v202_v47 = vadd.f32 %v201_v46, %v200_v45 }
 0x10d   :  { %v203_v48 = vrot.slane %v202_v47, 1 }
 0x10f   :  { %v204_v49 = vadd.f32 %v203_v48, %v202_v47 }
 0x111   :  { %v205_v50 = vmul.f32 0.05, %v204_v49 }
 0x113   :  { %v207_v51 = vadd.f32 1e-05, %v205_v50 }
 0x115   :  { %802 = vrsqrt.f32 %v207_v51  ;;  %v388_v51 = vld [vmem:[%s1026_s5] sm:$0x1] }
 0x122   :  { %v803_v54 = vpop.eup %802 }
 0x123   :  { %v209_v55 = vmul.f32 %v803_v54, %v206_v52 }
 0x125   :  { %v217_v57 = vrot.slane %v209_v55, %v944_v53  ;;  %v211_v58 = vmul.f32 %v209_v55, %v183_v34  ;;  %v392_v55 = vld [vmem:[%s1027_s6] sm:$0x1] }
 0x127   :  { %v212_v59 = vsub.f32 %v210_v56, %v211_v58  ;;  %v220_v60 = vmul.f32 %v217_v57, %v162_v21  ;;  %v219_v61 = vmul.f32 %v217_v57, %v159_v19  ;;  %v221_v63 = vmul.f32 %v732_v18, %v217_v57 }
 0x129   :  { %v227_v62 = vrot.slane %v212_v59, %v944_v53 }
 0x12b   :  { %v229_v0 = vadd.f32 %v227_v62, %v219_v61  ;;  %v230_v1 = vadd.f32 %v227_v62, %v220_v60  ;;  %v231_v2 = vadd.f32 %v227_v62, %v221_v63 }
 0x12d   :  { %v233_v3 = vmax.f32 %v229_v0, 0.0  ;;  %v234_v4 = vmax.f32 %v230_v1, 0.0  ;;  %v235_v5 = vmax.f32 %v231_v2, 0.0 }
 0x12f   :  { %v241_v6 = vpack.c.bf16 %v234_v4, %v233_v3  ;;  %v671_v9 = vpack.c.bf16 %v825_v8, %v235_v5 }
 0x131   :  { %750 = vmatprep.mubr.bf16.mxu1 %v241_v6 }
 0x132   :  { %751 = vmatmul.mubr.msk.bf16.vlgmr.msra.gmra.mxu1 %vm953_vm2, %v671_v9 }
 0x1f2   :  { %v752_v18 = vpop.f32.mrf.mxu1 }
 0x1f4   :  { %v341_v19 = vpop.f32.mrf.mxu1 }
 0x1f6   :  { %v753_v20 = vpop.f32.mrf.mxu1 }
 0x1f8   :  { %v344_v21 = vpop.f32.mrf.mxu1 }
 0x1f9   :  { %v356_v22 = vadd.f32 %v344_v21, %v341_v19 }
 0x1fb   :  { %v357_v23 = vadd.f32 %v752_v18, %v356_v22 }
 0x1fd   :  { %v358_v24 = vadd.f32 %v753_v20, %v357_v23 }
 0x1ff   :  { %v359_v25 = vrot.slane %v358_v24, 4 }
 0x201   :  { %v360_v27 = vadd.f32 %v359_v25, %v358_v24 }
 0x203   :  { %v361_v28 = vrot.slane %v360_v27, 2 }
 0x205   :  { %v362_v29 = vadd.f32 %v361_v28, %v360_v27 }
 0x207   :  { %v363_v30 = vrot.slane %v362_v29, 1 }
 0x209   :  { %v364_v31 = vadd.f32 %v363_v30, %v362_v29 }
 0x20b   :  { %v365_v33 = vmul.f32 0.05, %v364_v31 }
 0x20d   :  { %v366_v34 = vsub.f32 %v341_v19, %v365_v33  ;;  %v367_v35 = vsub.f32 %v344_v21, %v365_v33  ;;  %v368_v36 = vsub.f32 %v752_v18, %v365_v33 }
 0x20f   :  { %v372_v37 = vsel %vm43_vm0, %v368_v36, 0.0  ;;  %v374_v38 = vmul.f32 %v366_v34, %v366_v34  ;;  %v375_v39 = vmul.f32 %v367_v35, %v367_v35 }
 0x210   :  { %v376_v40 = vmul.f32 %v372_v37, %v372_v37 }
 0x211   :  { %v378_v41 = vadd.f32 %v375_v39, %v374_v38 }
 0x213   :  { %v379_v42 = vadd.f32 %v378_v41, %v376_v40  ;;  %v570_v40 = vld [vmem:[%s1028_s8] sm:$0x1] }
 0x215   :  { %v381_v43 = vrot.slane %v379_v42, 4 }
 0x217   :  { %v382_v44 = vadd.f32 %v381_v43, %v379_v42  ;;  %v574_v42 = vld [vmem:[%s1029_s9] sm:$0x1] }
 0x219   :  { %v383_v45 = vrot.slane %v382_v44, 2 }
 0x21b   :  { %v384_v46 = vadd.f32 %v383_v45, %v382_v44  ;;  %v598_v45 = vand.u32 127, %v36_v26 }
 0x21d   :  { %v385_v47 = vrot.slane %v384_v46, 1  ;;  %vm599_vm3 = vcmp.lt.s32.totalorder %v598_v45, 10 }
 0x21f   :  { %v386_v48 = vadd.f32 %v385_v47, %v384_v46 }
 0x221   :  { %v387_v49 = vmul.f32 0.05, %v386_v48 }
 0x223   :  { %v389_v50 = vadd.f32 1e-05, %v387_v49 }
 0x225   :  { %804 = vrsqrt.f32 %v389_v50 }
 0x232   :  { %v805_v52 = vpop.eup %804 }
 0x233   :  { %v391_v54 = vmul.f32 %v805_v52, %v388_v51 }
 0x235   :  { %v393_v56 = vmul.f32 %v391_v54, %v365_v33  ;;  %v399_v57 = vrot.slane %v391_v54, %v944_v53 }
 0x237   :  { %v394_v58 = vsub.f32 %v392_v55, %v393_v56  ;;  %v402_v59 = vmul.f32 %v399_v57, %v344_v21  ;;  %v403_v60 = vmul.f32 %v752_v18, %v399_v57  ;;  %v401_v62 = vmul.f32 %v399_v57, %v341_v19 }
 0x239   :  { %v409_v61 = vrot.slane %v394_v58, %v944_v53 }
 0x23b   :  { %v412_v63 = vadd.f32 %v409_v61, %v402_v59  ;;  %v413_v0 = vadd.f32 %v409_v61, %v403_v60  ;;  %v411_v1 = vadd.f32 %v409_v61, %v401_v62 }
 0x23d   :  { %v416_v2 = vmax.f32 %v412_v63, 0.0  ;;  %v417_v3 = vmax.f32 %v413_v0, 0.0  ;;  %v415_v4 = vmax.f32 %v411_v1, 0.0 }
 0x23f   :  { %v423_v5 = vpack.c.bf16 %v416_v2, %v415_v4  ;;  %v682_v6 = vpack.c.bf16 %v825_v8, %v417_v3 }
 0x241   :  { %770 = vmatprep.mubr.bf16.mxu0 %v423_v5 }
 0x242   :  { %771 = vmatmul.mubr.msk.bf16.vlgmr.msra.gmra.mxu0 %vm953_vm2, %v682_v6 }
 0x302   :  { %v772_v9 = vpop.f32.mrf.mxu0 }
 0x304   :  { %v523_v10 = vpop.f32.mrf.mxu0 }
 0x306   :  { %v773_v11 = vpop.f32.mrf.mxu0 }
 0x308   :  { %v526_v12 = vpop.f32.mrf.mxu0 }
 0x309   :  { %v538_v13 = vadd.f32 %v526_v12, %v523_v10 }
 0x30b   :  { %v539_v14 = vadd.f32 %v772_v9, %v538_v13 }
 0x30d   :  { %v540_v15 = vadd.f32 %v773_v11, %v539_v14 }
 0x30f   :  { %v541_v16 = vrot.slane %v540_v15, 4 }
 0x311   :  { %v542_v17 = vadd.f32 %v541_v16, %v540_v15 }
 0x313   :  { %v543_v18 = vrot.slane %v542_v17, 2 }
 0x315   :  { %v544_v19 = vadd.f32 %v543_v18, %v542_v17 }
 0x317   :  { %v545_v20 = vrot.slane %v544_v19, 1 }
 0x319   :  { %v546_v21 = vadd.f32 %v545_v20, %v544_v19 }
 0x31b   :  { %v547_v22 = vmul.f32 0.05, %v546_v21 }
 0x31d   :  { %v548_v23 = vsub.f32 %v523_v10, %v547_v22  ;;  %v549_v8 = vsub.f32 %v526_v12, %v547_v22  ;;  %v550_v24 = vsub.f32 %v772_v9, %v547_v22 }
 0x31f   :  { %v554_v7 = vsel %vm43_vm0, %v550_v24, 0.0  ;;  %v556_v25 = vmul.f32 %v548_v23, %v548_v23  ;;  %v557_v27 = vmul.f32 %v549_v8, %v549_v8 }
 0x320   :  { %v558_v28 = vmul.f32 %v554_v7, %v554_v7 }
 0x321   :  { %v560_v29 = vadd.f32 %v557_v27, %v556_v25 }
 0x323   :  { %v561_v30 = vadd.f32 %v560_v29, %v558_v28 }
 0x325   :  { %v563_v31 = vrot.slane %v561_v30, 4 }
 0x327   :  { %v564_v33 = vadd.f32 %v563_v31, %v561_v30 }
 0x329   :  { %v565_v34 = vrot.slane %v564_v33, 2 }
 0x32b   :  { %v566_v35 = vadd.f32 %v565_v34, %v564_v33 }
 0x32d   :  { %v567_v36 = vrot.slane %v566_v35, 1 }
 0x32f   :  { %v568_v37 = vadd.f32 %v567_v36, %v566_v35 }
 0x331   :  { %v569_v38 = vmul.f32 0.05, %v568_v37 }
 0x333   :  { %v571_v39 = vadd.f32 1e-05, %v569_v38 }
 0x335   :  { %806 = vrsqrt.f32 %v571_v39 }
 0x342   :  { %v807_v32 = vpop.eup %806 }
 0x343   :  { %v573_v41 = vmul.f32 %v807_v32, %v570_v40 }
 0x345   :  { %v575_v43 = vmul.f32 %v573_v41, %v547_v22  ;;  %v581_v44 = vrot.slane %v573_v41, %v944_v53 }
 0x347   :  { %v576_v46 = vsub.f32 %v574_v42, %v575_v43  ;;  %v585_v47 = vmul.f32 %v772_v9, %v581_v44  ;;  %v583_v49 = vmul.f32 %v581_v44, %v523_v10  ;;  %v584_v50 = vmul.f32 %v581_v44, %v526_v12 }
 0x348   :  { %v586_v54 = vmul.f32 %v773_v11, %v581_v44 }
 0x349   :  { %v591_v48 = vrot.slane %v576_v46, %v944_v53 }
 0x34b   :  { %v595_v51 = vadd.f32 %v591_v48, %v585_v47  ;;  %v593_v52 = vadd.f32 %v591_v48, %v583_v49  ;;  %v596_v57 = vadd.f32 %v591_v48, %v586_v54  ;;  %v594_v58 = vadd.f32 %v591_v48, %v584_v50 }
 0x34d   :  { %v602_v55 = vsel %vm599_vm3, %v595_v51, -1e+30  ;;  %v600_v56 = vsel %vm599_vm3, %v593_v52, -1e+30  ;;  %v603_v59 = vsel %vm599_vm3, %v596_v57, -1e+30 }
 0x34e   :  { %608 = vmax.xlane.f32.xlu1 %v602_v55  ;;  %604 = vmax.xlane.f32.xlu0 %v600_v56  ;;  %v601_v60 = vsel %vm599_vm3, %v594_v58, -1e+30 }
 0x352   :  { %610 = vmax.xlane.f32.xlu1 %v603_v59  ;;  %606 = vmax.xlane.f32.xlu0 %v601_v60 }
 0x3d7   :  { %v609_v26 = vpop.xlane.xlu1 %608  ;;  %v605_v61 = vpop.xlane.xlu0 %604 }
 0x3d8   :  { %v614_v62 = vsub.f32 %v602_v55, %v609_v26  ;;  %v612_v53 = vsub.f32 %v600_v56, %v605_v61 }
 0x3da   :  { %v616_v63 = vmul.f32 1.442695, %v612_v53  ;;  %v620_v2 = vmul.f32 1.442695, %v614_v62 }
 0x3db   :  { %v611_v0 = vpop.xlane.xlu1 %610  ;;  %v607_v1 = vpop.xlane.xlu0 %606 }
 0x3dc   :  { %v613_v3 = vsub.f32 %v601_v60, %v607_v1  ;;  %808 = vpow2.f32 %v616_v63  ;;  %v615_v4 = vsub.f32 %v603_v59, %v611_v0 }
 0x3dd   :  { %810 = vpow2.f32 %v620_v2 }
 0x3de   :  { %v618_v5 = vmul.f32 1.442695, %v613_v3  ;;  %v622_v6 = vmul.f32 1.442695, %v615_v4 }
 0x3e0   :  { %812 = vpow2.f32 %v618_v5 }
 0x3e1   :  { %814 = vpow2.f32 %v622_v6 }
 0x3e9   :  { %v809_v9 = vpop.eup %808 }
 0x3ea   :  { %624 = vadd.xlane.f32.xlu0 %v809_v9  ;;  %v811_v10 = vpop.eup %810 }
 0x3ed   :  { %v813_v11 = vpop.eup %812 }
 0x3ee   :  { %628 = vadd.xlane.f32.xlu0 %v811_v10  ;;  %626 = vadd.xlane.f32.xlu1 %v813_v11  ;;  %v815_v12 = vpop.eup %814 }
 0x3f2   :  { %630 = vadd.xlane.f32.xlu1 %v815_v12 }
 0x473   :  { %v625_v13 = vpop.xlane.xlu0 %624 }
 0x474   :  { %816 = vlog2.f32 %v625_v13 }
 0x477   :  { %v627_v14 = vpop.xlane.xlu1 %626  ;;  %v629_v15 = vpop.xlane.xlu0 %628 }
 0x478   :  { %818 = vlog2.f32 %v627_v14 }
 0x479   :  { %820 = vlog2.f32 %v629_v15 }
 0x47b   :  { %v631_v16 = vpop.xlane.xlu1 %630 }
 0x47c   :  { %822 = vlog2.f32 %v631_v16 }
 0x481   :  { %v817_v17 = vpop.eup %816 }
 0x482   :  { %v633_v18 = vmul.f32 0.6931472, %v817_v17 }
 0x484   :  { %v640_v19 = vsub.f32 %v612_v53, %v633_v18 }
 0x485   :  { %v819_v20 = vpop.eup %818 }
 0x486   :  { %v821_v21 = vpop.eup %820  ;;  %644 = vst [vmem:[%s1030_s10] sm:$0xff] %v640_v19  ;;  %v635_v22 = vmul.f32 0.6931472, %v819_v20 }
 0x487   :  { %v637_v23 = vmul.f32 0.6931472, %v821_v21 }
 0x488   :  { %v641_v8 = vsub.f32 %v613_v3, %v635_v22 }
 0x489   :  { %v823_v24 = vpop.eup %822  ;;  %v642_v7 = vsub.f32 %v614_v62, %v637_v23 }
 0x48a   :  { %645 = vst [vmem:[%s1030_s10 + $0x8] sm:$0xff] %v641_v8  ;;  %v639_v25 = vmul.f32 0.6931472, %v823_v24 }
 0x48b   :  { %646 = vst [vmem:[%s1030_s10 + $0x10] sm:$0xff] %v642_v7 }
 0x48c   :  { %v643_v27 = vsub.f32 %v615_v4, %v639_v25 }
 0x48e   :  { %647 = vst [vmem:[%s1030_s10 + $0x18] sm:$0xff] %v643_v27 }

</bundles_post_ra>
